<compile_context>
chip_gen: v7x
topology: tpu7x:2x2x1
jax: 0.10.0
libtpu: 0.0.40
codegen_flags: <defaults>
</compile_context>

<pallas_src>
import math

import jax
import jax.numpy as jnp
from jax.experimental import pallas as pl
from jax.experimental.pallas import tpu as pltpu


def _make_reassoc_kernel(batch_tile, node_n, out_node_n, in_features, out_features):
    """(att @ x) @ w  -- fewer FLOPs when out_features >= in_features."""

    def kernel(xt_ref, w_ref, att_ref, b_ref, o_ref):
        # xt_ref : (node_n, batch_tile * in_features)   -- batch folded into lanes
        # w_ref  : (in_features, out_features)
        # att_ref: (out_node_n, node_n)
        # b_ref  : (1, out_features)
        # o_ref  : (out_node_n, batch_tile * out_features)
        # Stage 1: one wide MXU matmul over the whole batch tile.
        z = jnp.dot(att_ref[...], xt_ref[...], preferred_element_type=jnp.float32)
        w = w_ref[...]
        bias = b_ref[...]
        # Stage 2: per-batch-element projection to out_features (static unroll).
        for bb in range(batch_tile):
            zb = z[:, bb * in_features:(bb + 1) * in_features]          # (O, F_in)
            yb = jnp.dot(zb, w, preferred_element_type=jnp.float32) + bias
            o_ref[:, bb * out_features:(bb + 1) * out_features] = yb.astype(o_ref.dtype)

    return kernel


def _make_original_kernel(batch_tile, node_n, out_node_n, in_features, out_features):
    """att @ (x @ w)  -- fewer FLOPs when in_features > out_features."""

    def kernel(x2_ref, w_ref, att_ref, b_ref, o_ref):
        # x2_ref : (batch_tile * node_n, in_features)    -- batch folded into rows
        # Stage 1: one tall MXU matmul over the whole batch tile.
        support = jnp.dot(x2_ref[...], w_ref[...], preferred_element_type=jnp.float32)
        att = att_ref[...]
        bias = b_ref[...]
        for bb in range(batch_tile):
            sb = support[bb * node_n:(bb + 1) * node_n, :]               # (N, F_out)
            yb = jnp.dot(att, sb, preferred_element_type=jnp.float32) + bias
            o_ref[:, bb * out_features:(bb + 1) * out_features] = yb.astype(o_ref.dtype)

    return kernel


def graph_convolution(x, weight, att, bias=None, *, batch_tile=None):
    """GCN layer forward.  x: (B, node_n, in_features) -> (B, out_node_n, out_features)."""
    B, node_n, in_features = x.shape
    in_f2, out_features = weight.shape
    out_node_n, node_n2 = att.shape
    assert in_f2 == in_features and node_n2 == node_n

    if batch_tile is None:
        batch_tile = B          # small batches: the whole batch in a single grid step
    assert B % batch_tile == 0, "batch must be divisible by batch_tile"
    Bt = batch_tile
    num_steps = B // Bt

    if bias is None:
        bias = jnp.zeros((out_features,), dtype=x.dtype)
    bias2d = bias.reshape(1, out_features).astype(x.dtype)

    # Choose the matmul order with fewer FLOPs (both are algebraically identical).
    flops_original = node_n * in_features * out_features + out_node_n * node_n * out_features
    flops_reassoc = out_node_n * node_n * in_features + out_node_n * in_features * out_features
    reassociate = flops_reassoc <= flops_original

    if reassociate:
        kernel = _make_reassoc_kernel(Bt, node_n, out_node_n, in_features, out_features)
        # Batch folded into lanes: column index = batch * in_features + feature.
        x_in = x.transpose(1, 0, 2).reshape(node_n, B * in_features)
        x_spec = pl.BlockSpec((node_n, Bt * in_features), lambda b: (0, b))
    else:
        kernel = _make_original_kernel(Bt, node_n, out_node_n, in_features, out_features)
        # Batch folded into rows: row index = batch * node_n + node.
        x_in = x.reshape(B * node_n, in_features)
        x_spec = pl.BlockSpec((Bt * node_n, in_features), lambda b: (b, 0))

    out2d = pl.pallas_call(
        kernel,
        out_shape=jax.ShapeDtypeStruct((out_node_n, B * out_features), x.dtype),
        grid_spec=pltpu.PrefetchScalarGridSpec(
            num_scalar_prefetch=0,
            grid=(num_steps,),
            in_specs=[
                x_spec,
                # Grid-invariant operands: constant block index -> stay resident in VMEM.
                pl.BlockSpec((in_features, out_features), lambda b: (0, 0)),
                pl.BlockSpec((out_node_n, node_n), lambda b: (0, 0)),
                pl.BlockSpec((1, out_features), lambda b: (0, 0)),
            ],
            # Lane-dense output block: last dim is Bt * out_features.
            out_specs=pl.BlockSpec((out_node_n, Bt * out_features), lambda b: (0, b)),
        ),
        compiler_params=pltpu.CompilerParams(
            dimension_semantics=("parallel",)),
    )(x_in, weight, att, bias2d)

    # (out_node_n, B * out_features) -> (B, out_node_n, out_features)
    return out2d.reshape(out_node_n, B, out_features).transpose(1, 0, 2)


def init_params(key, in_features, out_features, node_n, out_node_n):
    """Mirrors GraphConvolution.reset_parameters: uniform(-stdv, stdv), stdv = 1/sqrt(out_features)."""
    stdv = 1.0 / math.sqrt(out_features)
    k_w, k_a, k_b = jax.random.split(key, 3)
    weight = jax.random.uniform(k_w, (in_features, out_features),
                                minval=-stdv, maxval=stdv, dtype=jnp.float32)
    att = jax.random.uniform(k_a, (out_node_n, node_n),
                             minval=-stdv, maxval=stdv, dtype=jnp.float32)
    bias = jax.random.uniform(k_b, (out_features,),
                              minval=-stdv, maxval=stdv, dtype=jnp.float32)
    return weight, att, bias


def gcn_reference(x, weight, att, bias):
    # Same math as the PyTorch forward.
    return jnp.matmul(att, jnp.matmul(x, weight)) + bias


if __name__ == "__main__":
    key = jax.random.PRNGKey(0)

    def run_case(name, B, node_n, out_node_n, in_f, out_f, batch_tile=None, seed_offset=0):
        k = jax.random.fold_in(key, seed_offset)
        k_x, k_p = jax.random.split(k)
        x = jax.random.normal(k_x, (B, node_n, in_f), dtype=jnp.float32)
        weight, att, bias = init_params(k_p, in_f, out_f, node_n, out_node_n)
        out = graph_convolution(x, weight, att, bias, batch_tile=batch_tile)
        out = jax.block_until_ready(out)
        ref = gcn_reference(x, weight, att, bias)
        assert out.shape == (B, out_node_n, out_f), (name, out.shape)
        err = float(jnp.max(jnp.abs(out - ref)))
        assert jnp.allclose(out, ref, atol=1e-4, rtol=1e-4), (name, err)

    # Case 1: module defaults (node_n=48), out_features > in_features -> reassociated
    #         order, whole batch in a single grid step (one wide MXU matmul).
    run_case("default", B=2, node_n=48, out_node_n=48, in_f=16, out_f=32)

    # Case 2: larger batch tiled across grid steps (128-aligned lane blocks, pipelined).
    run_case("tiled_batch", B=16, node_n=48, out_node_n=48, in_f=16, out_f=32,
             batch_tile=8, seed_offset=1)

    # Case 3: in_features > out_features -> original (x@w then att@support) order,
    #         with out_node_n != node_n.
    run_case("shrinking", B=2, node_n=48, out_node_n=40, in_f=32, out_f=16, seed_offset=2)

    print("KERNEL_OK")
</pallas_src>

<mosaic_0001>
module attributes {stable_mosaic.version = 11 : i64} {
  func.func @kernel(%arg0: i32, %arg1: memref<48x32xf32, #tpu.memory_space<vmem>>, %arg2: memref<16x32xf32, #tpu.memory_space<vmem>>, %arg3: memref<48x48xf32, #tpu.memory_space<vmem>>, %arg4: memref<1x32xf32, #tpu.memory_space<vmem>>, %arg5: memref<48x64xf32, #tpu.memory_space<vmem>>) attributes {dimension_semantics = [#tpu.dimension_semantics<parallel>], iteration_bounds = array<i64: 1>, scalar_prefetch = 0 : i64, scratch_operands = 0 : i64, tpu.core_type = #tpu.core_type<tc>, window_params = [{transform_indices = @transform_0, window_bounds = array<i64: 48, 32>}, {pipeline_mode = #tpu.pipeline_mode<synchronous>, transform_indices = @transform_1, window_bounds = array<i64: 16, 32>}, {pipeline_mode = #tpu.pipeline_mode<synchronous>, transform_indices = @transform_2, window_bounds = array<i64: 48, 48>}, {pipeline_mode = #tpu.pipeline_mode<synchronous>, transform_indices = @transform_3, window_bounds = array<i64: 1, 32>}, {transform_indices = @transform_4, window_bounds = array<i64: 48, 64>}]} {
    %c0 = arith.constant 0 : index
    %c0_0 = arith.constant 0 : index
    %0 = vector.load %arg3[%c0, %c0_0] : memref<48x48xf32, #tpu.memory_space<vmem>>, vector<48x48xf32>
    %c0_1 = arith.constant 0 : index
    %c0_2 = arith.constant 0 : index
    %1 = vector.load %arg1[%c0_1, %c0_2] : memref<48x32xf32, #tpu.memory_space<vmem>>, vector<48x32xf32>
    %cst = arith.constant dense<0.000000e+00> : vector<48x32xf32>
    %2 = tpu.matmul %0, %1, %cst {dimension_numbers = #tpu.dot_dimension_numbers<[1], [0], [0], [1], [0, 0, 1, 1], [], []>} : vector<48x48xf32>, vector<48x32xf32>, vector<48x32xf32> -> vector<48x32xf32>
    %c0_3 = arith.constant 0 : index
    %c0_4 = arith.constant 0 : index
    %3 = vector.load %arg2[%c0_3, %c0_4] : memref<16x32xf32, #tpu.memory_space<vmem>>, vector<16x32xf32>
    %c0_5 = arith.constant 0 : index
    %c0_6 = arith.constant 0 : index
    %4 = vector.load %arg4[%c0_5, %c0_6] : memref<1x32xf32, #tpu.memory_space<vmem>>, vector<1x32xf32>
    %5 = vector.extract_strided_slice %2 {offsets = [0, 0], sizes = [48, 16], strides = [1, 1]} : vector<48x32xf32> to vector<48x16xf32>
    %cst_7 = arith.constant dense<0.000000e+00> : vector<48x32xf32>
    %6 = tpu.matmul %5, %3, %cst_7 {dimension_numbers = #tpu.dot_dimension_numbers<[1], [0], [0], [1], [0, 0, 1, 1], [], []>} : vector<48x16xf32>, vector<16x32xf32>, vector<48x32xf32> -> vector<48x32xf32>
    %7 = vector.broadcast %4 : vector<1x32xf32> to vector<48x32xf32>
    %8 = arith.addf %6, %7 : vector<48x32xf32>
    %c0_8 = arith.constant 0 : index
    %c0_9 = arith.constant 0 : index
    %9 = vector.load %arg5[%c0_8, %c0_9] : memref<48x64xf32, #tpu.memory_space<vmem>>, vector<48x32xf32>
    tpu.vector_store %arg5[%c0_8, %c0_9], %8 {strides = array<i32>} : memref<48x64xf32, #tpu.memory_space<vmem>>, vector<48x32xf32>,
    %10 = vector.extract_strided_slice %2 {offsets = [0, 16], sizes = [48, 16], strides = [1, 1]} : vector<48x32xf32> to vector<48x16xf32>
    %cst_10 = arith.constant dense<0.000000e+00> : vector<48x32xf32>
    %11 = tpu.matmul %10, %3, %cst_10 {dimension_numbers = #tpu.dot_dimension_numbers<[1], [0], [0], [1], [0, 0, 1, 1], [], []>} : vector<48x16xf32>, vector<16x32xf32>, vector<48x32xf32> -> vector<48x32xf32>
    %12 = vector.broadcast %4 : vector<1x32xf32> to vector<48x32xf32>
    %13 = arith.addf %11, %12 : vector<48x32xf32>
    %c0_11 = arith.constant 0 : index
    %c32 = arith.constant 32 : index
    %14 = vector.load %arg5[%c0_11, %c32] : memref<48x64xf32, #tpu.memory_space<vmem>>, vector<48x32xf32>
    tpu.vector_store %arg5[%c0_11, %c32], %13 {strides = array<i32>} : memref<48x64xf32, #tpu.memory_space<vmem>>, vector<48x32xf32>,
    return
  }
  func.func @transform_0(%arg0: i32) -> (i32, i32) {
    %c0_i32 = arith.constant 0 : i32
    %c0_i32_0 = arith.constant 0 : i32
    return %c0_i32, %arg0 : i32, i32
  }
  func.func @transform_1(%arg0: i32) -> (i32, i32) {
    %c0_i32 = arith.constant 0 : i32
    %c0_i32_0 = arith.constant 0 : i32
    %c0_i32_1 = arith.constant 0 : i32
    return %c0_i32, %c0_i32_0 : i32, i32
  }
  func.func @transform_2(%arg0: i32) -> (i32, i32) {
    %c0_i32 = arith.constant 0 : i32
    %c0_i32_0 = arith.constant 0 : i32
    %c0_i32_1 = arith.constant 0 : i32
    return %c0_i32, %c0_i32_0 : i32, i32
  }
  func.func @transform_3(%arg0: i32) -> (i32, i32) {
    %c0_i32 = arith.constant 0 : i32
    %c0_i32_0 = arith.constant 0 : i32
    %c0_i32_1 = arith.constant 0 : i32
    return %c0_i32, %c0_i32_0 : i32, i32
  }
  func.func @transform_4(%arg0: i32) -> (i32, i32) {
    %c0_i32 = arith.constant 0 : i32
    %c0_i32_0 = arith.constant 0 : i32
    return %c0_i32, %arg0 : i32, i32
  }
}

</mosaic_0001>

<bundles_post_ra>
// kernel: tpu_custom_call.1
= control target key start
LH: loop header
LB: loop body
LE: loop exit
PB: predicated region body
PF: predicated region fallthrough
CT: control target
= control target key end

     0   :  { %vm30_vm0 = vcmask 392192   ;;  %s694_s0 = inlined_call_operand.vmem [shape: f32[48,32], index: 0, kind: input, shape index: {}]   ;;  %s695_s1 = inlined_call_operand.vmem [shape: f32[16,32], index: 1, kind: input, shape index: {}]   ;;  %s696_s2 = inlined_call_operand.vmem [shape: f32[48,48], index: 2, kind: input, shape index: {}]   ;;  %s697_s3 = inlined_call_operand.vmem [shape: f32[1,32], index: 3, kind: input, shape index: {}]   ;;  %s698_s4 = inlined_call_operand.hbm [shape: f32[48,64], index: 4, kind: output, shape index: {}]  }
   0x1   :  { %v24_v0 = vld [vmem:[%s694_s0] sm:$0xff]  ;;  %v25_v1 = vld [vmem:[%s694_s0 + $0x8] sm:$0xff]  ;;  %v26_v2 = vld [vmem:[%s694_s0 + $0x10] sm:$0xff] }
   0x2   :  { %v534_v3 = vpack.c.bf16 %v25_v1, %v24_v0  ;;  %v27_v4 = vld [vmem:[%s694_s0 + $0x18] sm:$0xff]  ;;  %v28_v6 = vld [vmem:[%s694_s0 + $0x20] sm:$0xff]  ;;  %v29_v7 = vld [vmem:[%s694_s0 + $0x28] sm:$0xff] }
   0x3   :  { %v538_v5 = vpack.c.bf16 %v27_v4, %v26_v2  ;;  %v18_v8 = vld [vmem:[%s696_s2] sm:$0xff]  ;;  %v145_v10 = vld [vmem:[%s695_s1 + $0x8] sm:$0xff] }
   0x4   :  { %535 = vmatprep.subr.bf16.mxu0 %v534_v3  ;;  %499 = vmatprep.mubr.msk.f32.mxu0 %vm30_vm0, %v18_v8  ;;  %v144_v9 = vld [vmem:[%s695_s1] sm:$0xff] }
   0x5   :  { %537 = vmatpush3.bf16.msra.mxu0 %v534_v3 }
   0x6   :  { %9 = vsyncpa [#allocation3], 0  ;;  %539 = vmatprep.subr.bf16.mxu0 %v538_v5  ;;  %v542_v11 = vpack.c.bf16 %v29_v7, %v28_v6  ;;  %v546_v12 = vpack.c.bf16 %v145_v10, %v144_v9  ;;  %v19_v13 = vld [vmem:[%s696_s2 + $0x8] sm:$0xff]  ;;  %v20_v14 = vld [vmem:[%s696_s2 + $0x10] sm:$0xff]  ;;  %vm153_vm1 = vcmask 130048   ;;  %s583_s15 = smov 112  }
   0x7   :  { %v21_v15 = vld [vmem:[%s696_s2 + $0x18] sm:$0xff]  ;;  %v22_v16 = vld [vmem:[%s696_s2 + $0x20] sm:$0xff]  ;;  %v23_v17 = vld [vmem:[%s696_s2 + $0x28] sm:$0xff]  ;;  %vm267_vm2 = vcmask 261120   ;;  %vm417_vm3 = vcmask 523520   ;;  %s585_s17 = smov [#allocation2]  }
   0x8   :  { %547 = vmatprep.subr.bf16.mxu1 %v546_v12  ;;  %v446_v30 = vld [vmem:[%s697_s3] ss:$0 sm:$0xff]  ;;  %s584_s3 = smov 32   ;;  %s429_s18 = sshll.u32 %s585_s17, 4  ;;  %s430_s18 = int_to_ptr.vmem [resolvable:$true] %s429_s18 }
   0x9   :  { %541 = vmatpush3.bf16.msra.mxu0 %v538_v5  ;;  %549 = vmatpush3.bf16.msra.mxu1 %v546_v12  ;;  %s559_s19 = scalar_lea.vmem %s430_s18, 768  ;;  %p564_p1 = scmp.lt.s32.totalorder %s430_s18, %s430_s18 }
   0xa   :  { %543 = vmatprep.subr.bf16.mxu0 %v542_v11  ;;  %551 = vmatprep.subr.bf16.mxu1 %v546_v12  ;;  %p560_p0 = scmp.ne.s32.totalorder %s430_s18, %s559_s19  ;;  %p565_p2 = scmp.lt.s32.totalorder %s559_s19, %s559_s19 }
   0xc   :  { %p566_p3 = por %p565_p2, %p564_p1 }
   0xd   :  { %545 = vmatpush3.bf16.msra.mxu0 %v542_v11 }
   0xe   :  { %p567_p4 = pnand %p566_p3, %p560_p0 }
  0x10   :  { %500 = vmatmul.mubr.msk.f32.vlgmr.msra.gmra.mrb[0].mxu0 %vm30_vm0, %v19_v13 }
  0x11   :  { %502 = vmatprep.mubr.msk.f32.mxu0 %vm30_vm0, %v20_v14 }
  0x14   :  { %503 = vmatmul.mubr.msk.f32.gmra.mrb[2].mxu0 %vm30_vm0, %v21_v15 }
  0x15   :  { %505 = vmatprep.mubr.msk.f32.mxu0 %vm30_vm0, %v22_v16 }
  0x18   :  { %506 = vmatmul.mubr.msk.f32.gmra.mrb[4].mxu0 %vm30_vm0, %v23_v17 }
  0xe3   :  { %v501_v18 = vpop.f32.mrb[0].mxu0 }
  0xe4   :  { %v115_v19 = vpop.f32.mrb[1].mxu0 }
  0xe5   :  { %274 = vrot.lane.b32.xlu0 %v115_v19, %s583_s15  ;;  %512 = vmatprep.mubr.msk.f32.mxu1 %vm153_vm1, %v115_v19 }
  0xe6   :  { %513 = vmatmul.mubr.msk.f32.vlgmr.msra.gmra.mrb[0].mxu1 %vm153_vm1, %v501_v18 }
  0xe7   :  { %v504_v20 = vpop.f32.mrb[2].mxu0  ;;  %553 = vmatpush3.bf16.msra.mxu1 %v546_v12 }
  0xe8   :  { %v125_v21 = vpop.f32.mrb[3].mxu0 }
  0xe9   :  { %276 = vrot.lane.b32.xlu0 %v501_v18, %s583_s15  ;;  %278 = vrot.lane.b32.xlu1 %v125_v21, %s583_s15 }
  0xea   :  { %515 = vmatprep.mubr.msk.f32.mxu1 %vm153_vm1, %v125_v21 }
  0xeb   :  { %516 = vmatmul.mubr.msk.f32.gmra.mrb[2].mxu1 %vm153_vm1, %v504_v20  ;;  %v507_v22 = vpop.f32.mrb[4].mxu0 }
  0xec   :  { %v135_v23 = vpop.f32.mrb[5].mxu0 }
  0xed   :  { %280 = vrot.lane.b32.xlu1 %v504_v20, %s583_s15  ;;  %518 = vmatprep.mubr.msk.f32.mxu1 %vm153_vm1, %v135_v23 }
  0xee   :  { %282 = vrot.lane.b32.xlu0 %v135_v23, %s583_s15 }
  0xef   :  { %519 = vmatmul.mubr.msk.f32.gmra.mrb[4].mxu1 %vm153_vm1, %v507_v22 }
  0xf1   :  { %284 = vrot.lane.b32.xlu1 %v507_v22, %s583_s15 }
 0x157   :  { %v275_v24 = vpop.permute.xlu0 %274 }
 0x158   :  { %525 = vmatprep.mubr.msk.f32.mxu1 %vm153_vm1, %v275_v24 }
 0x15b   :  { %v277_v25 = vpop.permute.xlu0 %276  ;;  %v279_v26 = vpop.permute.xlu1 %278 }
 0x15c   :  { %526 = vmatmul.mubr.msk.f32.vlgmr.msra.gmra.mrb[6].mxu1 %vm153_vm1, %v277_v25 }
 0x15d   :  { %528 = vmatprep.mubr.msk.f32.mxu1 %vm153_vm1, %v279_v26 }
 0x15f   :  { %v281_v27 = vpop.permute.xlu1 %280 }
 0x160   :  { %529 = vmatmul.mubr.msk.f32.gmra.mrb[8].mxu1 %vm153_vm1, %v281_v27  ;;  %v283_v28 = vpop.permute.xlu0 %282 }
 0x161   :  { %531 = vmatprep.mubr.msk.f32.mxu1 %vm153_vm1, %v283_v28 }
 0x163   :  { %v285_v29 = vpop.permute.xlu1 %284 }
 0x164   :  { %532 = vmatmul.mubr.msk.f32.gmra.mrb[10].mxu1 %vm153_vm1, %v285_v29 }
 0x1b9   :  { %v514_v31 = vpop.f32.mrb[0].mxu1 }
 0x1ba   :  { %v244_v32 = vadd.f32 %v514_v31, %v446_v30  ;;  %v238_v33 = vpop.f32.mrb[1].mxu1 }
 0x1bb   :  { %v239_v34 = vadd.f32 %v446_v30, %v238_v33 }
 0x1bc   :  { %269 = vst.msk [vmem:[#allocation2 + $0x8] sm:$0xff] %vm267_vm2, %v244_v32 }
 0x1bd   :  { %268 = vst.msk [vmem:[#allocation2] sm:$0xff] %vm267_vm2, %v239_v34 }
 0x1be   :  { %v517_v35 = vpop.f32.mrb[2].mxu1 }
 0x1bf   :  { %v254_v36 = vadd.f32 %v517_v35, %v446_v30  ;;  %v248_v37 = vpop.f32.mrb[3].mxu1 }
 0x1c0   :  { %v249_v38 = vadd.f32 %v446_v30, %v248_v37 }
 0x1c1   :  { %271 = vst.msk [vmem:[#allocation2 + $0x18] sm:$0xff] %vm267_vm2, %v254_v36 }
 0x1c2   :  { %270 = vst.msk [vmem:[#allocation2 + $0x10] sm:$0xff] %vm267_vm2, %v249_v38  ;;  %v520_v39 = vpop.f32.mrb[4].mxu1 }
 0x1c3   :  { %v264_v40 = vadd.f32 %v520_v39, %v446_v30  ;;  %v258_v41 = vpop.f32.mrb[5].mxu1 }
 0x1c4   :  { %v259_v42 = vadd.f32 %v446_v30, %v258_v41 }
 0x1c5   :  { %273 = vst.msk [vmem:[#allocation2 + $0x28] sm:$0xff] %vm267_vm2, %v264_v40 }
 0x1c6   :  { %272 = vst.msk [vmem:[#allocation2 + $0x20] sm:$0xff] %vm267_vm2, %v259_v42 }
 0x22f   :  { %v527_v43 = vpop.f32.mrb[6].mxu1 }
 0x230   :  { %v370_v44 = vadd.f32 %v527_v43, %v446_v30  ;;  %v364_v45 = vpop.f32.mrb[7].mxu1 }
 0x231   :  { %v365_v46 = vadd.f32 %v446_v30, %v364_v45 }
 0x232   :  { %401 = vrot.lane.b32.xlu1 %v370_v44, %s584_s3 }
 0x233   :  { %v530_v47 = vpop.f32.mrb[8].mxu1  ;;  %399 = vrot.lane.b32.xlu0 %v365_v46, %s584_s3 }
 0x234   :  { %v380_v48 = vadd.f32 %v530_v47, %v446_v30  ;;  %v374_v49 = vpop.f32.mrb[9].mxu1 }
 0x235   :  { %v375_v50 = vadd.f32 %v446_v30, %v374_v49 }
 0x236   :  { %405 = vrot.lane.b32.xlu1 %v380_v48, %s584_s3 }
 0x237   :  { %v533_v51 = vpop.f32.mrb[10].mxu1  ;;  %403 = vrot.lane.b32.xlu0 %v375_v50, %s584_s3 }
 0x238   :  { %v390_v52 = vadd.f32 %v533_v51, %v446_v30  ;;  %v384_v53 = vpop.f32.mrb[11].mxu1 }
 0x239   :  { %v385_v54 = vadd.f32 %v446_v30, %v384_v53 }
 0x23a   :  { %409 = vrot.lane.b32.xlu1 %v390_v52, %s584_s3 }
 0x23b   :  { %407 = vrot.lane.b32.xlu0 %v385_v54, %s584_s3 }
 0x2a4   :  { %v402_v55 = vpop.permute.xlu1 %401 }
 0x2a5   :  { %419 = vst.msk [vmem:[#allocation2 + $0x8] sm:$0xff] %vm417_vm3, %v402_v55  ;;  %v400_v56 = vpop.permute.xlu0 %399 }
 0x2a6   :  { %418 = vst.msk [vmem:[#allocation2] sm:$0xff] %vm417_vm3, %v400_v56 }
 0x2a8   :  { %v406_v57 = vpop.permute.xlu1 %405 }
 0x2a9   :  { %421 = vst.msk [vmem:[#allocation2 + $0x18] sm:$0xff] %vm417_vm3, %v406_v57  ;;  %v404_v58 = vpop.permute.xlu0 %403 }
 0x2aa   :  { %420 = vst.msk [vmem:[#allocation2 + $0x10] sm:$0xff] %vm417_vm3, %v404_v58 }
 0x2ac   :  { %v410_v59 = vpop.permute.xlu1 %409 }
 0x2ad   :  { %423 = vst.msk [vmem:[#allocation2 + $0x28] sm:$0xff] %vm417_vm3, %v410_v59  ;;  %v408_v60 = vpop.permute.xlu0 %407 }
 0x2ae   :  { %422 = vst.msk [vmem:[#allocation2 + $0x20] sm:$0xff] %vm417_vm3, %v408_v60 }
 0x2af   :  { %570 = shalt.err (!%p567_p4)
}
 0x2b0   :  { %s571_s22 = scalar_lea.hbm %s698_s4, 768 }
 0x2b1   :  { %p572_p5 = scmp.ne.s32.totalorder %s698_s4, %s571_s22  ;;  %p575_p6 = scmp.lt.u32.totalorder %s571_s22, %s698_s4 }
 0x2b3   :  { %p577_p7 = pnand %p575_p6, %p572_p5 }
 0x2b5   :  { %580 = shalt.err (!%p577_p7)
}
 0x2b6   :  { %s586_s27 = smov 128   ;;  %s587_s28 = smov 8  }
 0x2b7   :  { %435 = dma.vmem_to_hbm [thread:$0]  %s430_s18, 768, %s698_s4, [#allocation3], %s586_s27, %s586_s27, %s587_s28  }
 0x2b8   :  { %581 = dma.done.wait [#allocation3], 768  }
 0x2b9   :  { %582 = vsyncadd [#allocation3], 4294966528 }
 0x2ba   :  { %439 = vsyncpa [#allocation3], 1 }

</bundles_post_ra>
